<compile_context>
chip_gen: v6e
topology: v6e:2x2x1
jax: 0.10.0
libtpu: 0.0.40
codegen_flags: <defaults>
</compile_context>

<pallas_src>
import jax
import jax.numpy as jnp
from jax.experimental import pallas as pl
from jax.experimental.pallas import tpu as pltpu


def _round_up(x, m):
    return (x + m - 1) // m * m


def _noiser_kernel(x_ref, w_ref, b_ref, o_ref):
    """out = x @ W + b  (single linear layer, no activation)."""
    out = jnp.dot(x_ref[...], w_ref[...],
                  preferred_element_type=jnp.float32) + b_ref[...]
    o_ref[...] = out.astype(o_ref.dtype)


@jax.jit
def noiser_forward(x, w, b):
    """Apply the Noiser linear layer with a Pallas kernel.

    x: (B, C) activations; w: (C, C) stored as (in, out); b: (C,) bias.
    """
    B, C = x.shape
    assert w.shape == (C, C) and b.shape == (C,)

    # Lane-dense feature dim: pad C up to a multiple of 128.
    c_pad = _round_up(max(C, 128), 128)

    # Large batch tiles to amortize per-grid-step overhead, clamped so the
    # double-buffered in+out activation tiles stay far below scoped VMEM
    # (64 MiB physical ceiling on v7x).
    block_b = min(_round_up(B, 8), 1024)
    tile_bytes = 2 * 2 * block_b * c_pad * 4  # (in+out) x double-buffer x f32
    while tile_bytes > (16 << 20) and block_b > 8:
        block_b //= 2
        tile_bytes //= 2
    b_pad = _round_up(B, block_b)

    # Zero-padding is exact for a linear layer: padded rows/cols contribute 0.
    x_p = jnp.pad(x, ((0, b_pad - B), (0, c_pad - C)))
    w_p = jnp.pad(w, ((0, c_pad - C), (0, c_pad - C)))
    bias_p = jnp.pad(b.reshape(1, C), ((0, 0), (0, c_pad - C)))

    grid = (b_pad // block_b,)
    x_spec = pl.BlockSpec((block_b, c_pad), lambda i: (i, 0))
    o_spec = pl.BlockSpec((block_b, c_pad), lambda i: (i, 0))
    rep = lambda shape: pl.BlockSpec(shape, lambda i: (0, 0))

    cost = pl.CostEstimate(
        flops=2 * B * C * C,
        transcendentals=0,
        bytes_accessed=4 * (2 * B * C + C * C + C),
    )

    out_p = pl.pallas_call(
        _noiser_kernel,
        out_shape=jax.ShapeDtypeStruct((b_pad, c_pad), x.dtype),
        grid_spec=pltpu.PrefetchScalarGridSpec(
            num_scalar_prefetch=0,
            grid=grid,
            in_specs=[x_spec, rep(w_p.shape), rep(bias_p.shape)],
            out_specs=o_spec,
        ),
        compiler_params=pltpu.CompilerParams(
            dimension_semantics=("parallel",)),
        cost_estimate=cost,
    )(x_p, w_p, bias_p)

    return out_p[:B, :C]


def init_noiser_params(num_continuous, dtype=jnp.float32):
    """PyTorch Noiser init: weight and bias are zeros (and frozen)."""
    # TODO(synk): requires_grad=False is a training-time concern; the forward
    # pass only needs the zero-initialized parameters.
    w = jnp.zeros((num_continuous, num_continuous), dtype)  # stored (in, out)
    b = jnp.zeros((num_continuous,), dtype)
    return w, b


def noiser_reference(x, w, b):
    """Pure-JAX reference for correctness checks."""
    return x @ w + b


if __name__ == "__main__":
    num_continuous = 12
    B = 8

    key = jax.random.PRNGKey(0)
    kx, kw, kb = jax.random.split(key, 3)
    x = jax.random.normal(kx, (B, num_continuous), dtype=jnp.float32)

    # 1) Faithful Noiser: zero weight / zero bias -> output is all zeros.
    w, b = init_noiser_params(num_continuous)
    out = jax.block_until_ready(noiser_forward(x, w, b))
    assert out.shape == (B, num_continuous)
    assert jnp.allclose(out, noiser_reference(x, w, b), atol=1e-6)
    assert jnp.allclose(out, 0.0)

    # 2) Generic linear check (non-zero params) to validate the kernel math.
    w_r = jax.random.normal(kw, (num_continuous, num_continuous), jnp.float32)
    b_r = jax.random.normal(kb, (num_continuous,), jnp.float32)
    out_r = jax.block_until_ready(noiser_forward(x, w_r, b_r))
    assert jnp.allclose(out_r, noiser_reference(x, w_r, b_r),
                        atol=1e-5, rtol=1e-5)

    # 3) Ragged, larger batch exercises the padding path and a multi-step grid
    #    (>= 2 parallel steps, so both v7x TensorCores get work).
    B2 = 2000
    x2 = jax.random.normal(kx, (B2, num_continuous), dtype=jnp.float32)
    out2 = jax.block_until_ready(noiser_forward(x2, w_r, b_r))
    assert out2.shape == (B2, num_continuous)
    assert jnp.allclose(out2, noiser_reference(x2, w_r, b_r),
                        atol=1e-5, rtol=1e-5)

    print("KERNEL_OK")
</pallas_src>

<mosaic_0001>
module attributes {stable_mosaic.version = 11 : i64} {
  func.func @_noiser_kernel(%arg0: i32, %arg1: memref<8x128xf32, #tpu.memory_space<vmem>>, %arg2: memref<128x128xf32, #tpu.memory_space<vmem>>, %arg3: memref<1x128xf32, #tpu.memory_space<vmem>>, %arg4: memref<8x128xf32, #tpu.memory_space<vmem>>) attributes {dimension_semantics = [#tpu.dimension_semantics<parallel>], iteration_bounds = array<i64: 1>, scalar_prefetch = 0 : i64, scratch_operands = 0 : i64, tpu.core_type = #tpu.core_type<tc>, window_params = [{transform_indices = @transform_0, window_bounds = array<i64: 8, 128>}, {pipeline_mode = #tpu.pipeline_mode<synchronous>, transform_indices = @transform_1, window_bounds = array<i64: 128, 128>}, {pipeline_mode = #tpu.pipeline_mode<synchronous>, transform_indices = @transform_2, window_bounds = array<i64: 1, 128>}, {transform_indices = @transform_3, window_bounds = array<i64: 8, 128>}]} {
    %c0 = arith.constant 0 : index
    %c0_0 = arith.constant 0 : index
    %0 = vector.load %arg1[%c0, %c0_0] : memref<8x128xf32, #tpu.memory_space<vmem>>, vector<8x128xf32>
    %c0_1 = arith.constant 0 : index
    %c0_2 = arith.constant 0 : index
    %1 = vector.load %arg2[%c0_1, %c0_2] : memref<128x128xf32, #tpu.memory_space<vmem>>, vector<128x128xf32>
    %cst = arith.constant dense<0.000000e+00> : vector<8x128xf32>
    %2 = tpu.matmul %0, %1, %cst {dimension_numbers = #tpu.dot_dimension_numbers<[1], [0], [0], [1], [0, 0, 1, 1], [], []>} : vector<8x128xf32>, vector<128x128xf32>, vector<8x128xf32> -> vector<8x128xf32>
    %c0_3 = arith.constant 0 : index
    %c0_4 = arith.constant 0 : index
    %3 = vector.load %arg3[%c0_3, %c0_4] : memref<1x128xf32, #tpu.memory_space<vmem>>, vector<1x128xf32>
    %4 = vector.broadcast %3 : vector<1x128xf32> to vector<8x128xf32>
    %5 = arith.addf %2, %4 : vector<8x128xf32>
    %c0_5 = arith.constant 0 : index
    %c0_6 = arith.constant 0 : index
    %6 = vector.load %arg4[%c0_5, %c0_6] : memref<8x128xf32, #tpu.memory_space<vmem>>, vector<8x128xf32>
    tpu.vector_store %arg4[%c0_5, %c0_6], %5 {strides = array<i32>} : memref<8x128xf32, #tpu.memory_space<vmem>>, vector<8x128xf32>,
    return
  }
  func.func @transform_0(%arg0: i32) -> (i32, i32) {
    %c0_i32 = arith.constant 0 : i32
    %c0_i32_0 = arith.constant 0 : i32
    return %arg0, %c0_i32 : i32, i32
  }
  func.func @transform_1(%arg0: i32) -> (i32, i32) {
    %c0_i32 = arith.constant 0 : i32
    %c0_i32_0 = arith.constant 0 : i32
    %c0_i32_1 = arith.constant 0 : i32
    return %c0_i32, %c0_i32_0 : i32, i32
  }
  func.func @transform_2(%arg0: i32) -> (i32, i32) {
    %c0_i32 = arith.constant 0 : i32
    %c0_i32_0 = arith.constant 0 : i32
    %c0_i32_1 = arith.constant 0 : i32
    return %c0_i32, %c0_i32_0 : i32, i32
  }
  func.func @transform_3(%arg0: i32) -> (i32, i32) {
    %c0_i32 = arith.constant 0 : i32
    %c0_i32_0 = arith.constant 0 : i32
    return %arg0, %c0_i32 : i32, i32
  }
}

</mosaic_0001>

<bundles_post_ra>
// kernel: noiser_forward.1
= control target key start
LH: loop header
LB: loop body
LE: loop exit
PB: predicated region body
PF: predicated region fallthrough
CT: control target
= control target key end

     0   :  { %v202_v1 = vmov 0.0   ;;  %vm203_vm0 = vmmov 0   ;;  %s282_s0 = inlined_call_operand.vmem [shape: f32[8,128], index: 0, kind: input, shape index: {}]   ;;  %s283_s1 = inlined_call_operand.vmem [shape: f32[128,128], index: 1, kind: input, shape index: {}]   ;;  %s284_s2 = inlined_call_operand.vmem [shape: f32[1,128], index: 2, kind: input, shape index: {}]   ;;  %s285_s3 = inlined_call_operand.hbm [shape: f32[8,128], index: 3, kind: output, shape index: {}]  }
   0x1   :  { %v31_v0 = vld [vmem:[%s283_s1 + $0x78] sm:$0xff]  ;;  %142 = vmatprep.subr.mxu0 %v202_v1  ;;  %v30_v2 = vld [vmem:[%s283_s1 + $0x70] sm:$0xff]  ;;  %174 = vmatprep.mubr.msk.f32.mxu0 %vm203_vm0, %v202_v1  ;;  %v29_v3 = vld [vmem:[%s283_s1 + $0x68] sm:$0xff] }
   0x2   :  { %143 = vmatpush3.msra.mxu0 %v31_v0  ;;  %v28_v4 = vld [vmem:[%s283_s1 + $0x60] sm:$0xff] }
   0x3   :  { %144 = vmatprep.subr.mxu0 %v202_v1 }
   0x4   :  { %145 = vmatpush3.msra.mxu0 %v30_v2 }
   0x5   :  { %146 = vmatprep.subr.mxu0 %v202_v1 }
   0x6   :  { %147 = vmatpush3.msra.mxu0 %v29_v3 }
   0x7   :  { %8 = vsyncpa [#allocation3], 0  ;;  %148 = vmatprep.subr.mxu0 %v202_v1  ;;  %v27_v5 = vld [vmem:[%s283_s1 + $0x58] sm:$0xff]  ;;  %v26_v6 = vld [vmem:[%s283_s1 + $0x50] sm:$0xff]  ;;  %s204_s21 = smov [#allocation2]  }
   0x8   :  { %149 = vmatpush3.msra.mxu0 %v28_v4  ;;  %v25_v7 = vld [vmem:[%s283_s1 + $0x48] sm:$0xff]  ;;  %v24_v8 = vld [vmem:[%s283_s1 + $0x40] sm:$0xff]  ;;  %v23_v9 = vld [vmem:[%s283_s1 + $0x38] sm:$0xff]  ;;  %s116_s22 = sshll.u32 %s204_s21, 4  ;;  %s117_s22 = int_to_ptr.vmem [resolvable:$true] %s116_s22 }
   0x9   :  { %150 = vmatprep.subr.mxu0 %v202_v1  ;;  %v22_v10 = vld [vmem:[%s283_s1 + $0x30] sm:$0xff]  ;;  %v21_v11 = vld [vmem:[%s283_s1 + $0x28] sm:$0xff]  ;;  %v20_v12 = vld [vmem:[%s283_s1 + $0x20] sm:$0xff]  ;;  %p185_p1 = scmp.lt.s32.totalorder %s117_s22, %s117_s22 }
   0xa   :  { %151 = vmatpush3.msra.mxu0 %v27_v5  ;;  %v19_v13 = vld [vmem:[%s283_s1 + $0x18] sm:$0xff]  ;;  %v18_v14 = vld [vmem:[%s283_s1 + $0x10] sm:$0xff]  ;;  %v17_v15 = vld [vmem:[%s283_s1 + $0x8] sm:$0xff] }
   0xb   :  { %152 = vmatprep.subr.mxu0 %v202_v1  ;;  %v16_v16 = vld [vmem:[%s283_s1] sm:$0xff]  ;;  %s180_s1 = scalar_lea.vmem %s117_s22, 128 }
   0xc   :  { %153 = vmatpush3.msra.mxu0 %v26_v6  ;;  %v15_v17 = vld [vmem:[%s282_s0] sm:$0xff]  ;;  %p181_p0 = scmp.ne.s32.totalorder %s117_s22, %s180_s1  ;;  %p186_p2 = scmp.lt.s32.totalorder %s180_s1, %s180_s1 }
   0xd   :  { %154 = vmatprep.subr.mxu0 %v202_v1  ;;  %v124_v18 = vld [vmem:[%s284_s2] ss:$0 sm:$0xff] }
   0xe   :  { %155 = vmatpush3.msra.mxu0 %v25_v7  ;;  %p187_p3 = por %p186_p2, %p185_p1 }
   0xf   :  { %156 = vmatprep.subr.mxu0 %v202_v1 }
  0x10   :  { %157 = vmatpush3.msra.mxu0 %v24_v8  ;;  %p188_p4 = pnand %p187_p3, %p181_p0 }
  0x11   :  { %158 = vmatprep.subr.mxu0 %v202_v1 }
  0x12   :  { %159 = vmatpush3.msra.mxu0 %v23_v9 }
  0x13   :  { %160 = vmatprep.subr.mxu0 %v202_v1 }
  0x14   :  { %161 = vmatpush3.msra.mxu0 %v22_v10 }
  0x15   :  { %162 = vmatprep.subr.mxu0 %v202_v1 }
  0x16   :  { %163 = vmatpush3.msra.mxu0 %v21_v11 }
  0x17   :  { %164 = vmatprep.subr.mxu0 %v202_v1 }
  0x18   :  { %165 = vmatpush3.msra.mxu0 %v20_v12 }
  0x19   :  { %166 = vmatprep.subr.mxu0 %v202_v1 }
  0x1a   :  { %167 = vmatpush3.msra.mxu0 %v19_v13 }
  0x1b   :  { %168 = vmatprep.subr.mxu0 %v202_v1 }
  0x1c   :  { %169 = vmatpush3.msra.mxu0 %v18_v14 }
  0x1d   :  { %170 = vmatprep.subr.mxu0 %v202_v1 }
  0x1e   :  { %171 = vmatpush3.msra.mxu0 %v17_v15 }
  0x1f   :  { %172 = vmatprep.subr.mxu0 %v202_v1 }
  0x20   :  { %173 = vmatpush3.msra.mxu0 %v16_v16 }
  0x21   :  { %175 = vmatmul.mubr.f32.vlgmr.msra.gmra.mxu0 %v15_v17 }
  0xe1   :  { %v105_v19 = vpop.f32.mrf.mxu0 }
  0xe2   :  { %v106_v20 = vadd.f32 %v124_v18, %v105_v19 }
  0xe3   :  { %v176_v21 = vpop.f32.mrf.mxu0 }
  0xe4   :  { %109 = vst [vmem:[#allocation2] sm:$0xff] %v106_v20 }
  0xe5   :  { %191 = shalt.err (!%p188_p4)
}
  0xe6   :  { %119 = dma.vmem_to_hbm [thread:$0]  %s117_s22, 128, %s285_s3, [#allocation3]  }
  0xe7   :  { %200 = dma.done.wait [#allocation3], 128  }
  0xe8   :  { %201 = vsyncadd [#allocation3], 4294967168 }
  0xe9   :  { %123 = vsyncpa [#allocation3], 1 }

</bundles_post_ra>
